<compile_context>
chip_gen: v7x
topology: tpu7x:2x2x1
jax: 0.10.0
libtpu: 0.0.40
codegen_flags: <defaults>
</compile_context>

<pallas_src>
import jax
import jax.numpy as jnp
from jax import lax
from jax.experimental import pallas as pl
from jax.experimental.pallas import tpu as pltpu


def _round_up(n, m):
    return ((n + m - 1) // m) * m


def critic_kernel(s_ref, a_ref, w1s_ref, w1a_ref, b1_ref, w3_ref, b3_ref,
                  wpi_ref, bpi_ref, q_ref):
    # MXU feed is bf16 (cast on-chip; inputs arrive f32), accumulation is f32.
    s = s_ref[...].astype(jnp.bfloat16)
    a = a_ref[...].astype(jnp.bfloat16)

    # fc1 over the (virtual) concat: cat([s, a]) @ W1 == s @ W1s + a @ W1a
    h1 = (jnp.dot(s, w1s_ref[...], preferred_element_type=jnp.float32)
          + jnp.dot(a, w1a_ref[...], preferred_element_type=jnp.float32)
          + b1_ref[...])
    h1 = jnp.maximum(h1, 0.0)                       # f32 epilogue

    # fc3 (bf16 MXU feed, f32 accumulate)
    h3 = jnp.dot(h1.astype(jnp.bfloat16), w3_ref[...],
                 preferred_element_type=jnp.float32) + b3_ref[...]
    h3 = jnp.maximum(h3, 0.0)                       # f32 epilogue

    # pi (N=1): contract F between (1, F) and (TB, F) -> lane-major (1, TB) row.
    q_row = lax.dot_general(
        wpi_ref[...], h3.astype(jnp.bfloat16),
        dimension_numbers=(((1,), (1,)), ((), ())),
        preferred_element_type=jnp.float32)
    q_ref[...] = q_row + bpi_ref[0, 0]


def _choose_tb(B, tb_max):
    if B <= 128:
        # Single tile; round to the bf16 sublane pack (16 rows).
        return _round_up(B, 16)
    # Multiple of 128; cap so the grid has >= 2 steps (v7x has 2 TensorCores).
    return min(tb_max, _round_up(-(-B // 2), 128))


def critic_forward(state, action, params, *, tb_max=1024):
    """Wrapper: layout plumbing only; all casts/compute live inside the kernel."""
    w1s, w1a, b1, w3, b3, wpi, bpi = params
    B, Ds = state.shape
    Da = action.shape[1]
    F = w1s.shape[1]

    TB = _choose_tb(B, tb_max)
    B_pad = _round_up(B, TB)
    s, a = state, action
    if B_pad != B:
        # TODO(synk): for large ragged batches, drop this pad and use
        # grid=pl.cdiv(B, TB) (ragged last block), relying on the [:B] slice.
        pad = B_pad - B
        s = jnp.pad(s, ((0, pad), (0, 0)))
        a = jnp.pad(a, ((0, pad), (0, 0)))

    grid = (B_pad // TB,)

    out = pl.pallas_call(
        critic_kernel,
        out_shape=jax.ShapeDtypeStruct((1, B_pad), jnp.float32),
        grid_spec=pltpu.PrefetchScalarGridSpec(
            num_scalar_prefetch=0,
            grid=grid,
            in_specs=[
                pl.BlockSpec((TB, Ds), lambda i: (i, 0)),   # state tile (f32)
                pl.BlockSpec((TB, Da), lambda i: (i, 0)),   # action tile (f32)
                pl.BlockSpec((Ds, F), lambda i: (0, 0)),    # W1 (state part, bf16)
                pl.BlockSpec((Da, F), lambda i: (0, 0)),    # W1 (action part, bf16)
                pl.BlockSpec((1, F), lambda i: (0, 0)),     # b1 (f32)
                pl.BlockSpec((F, F), lambda i: (0, 0)),     # W3 (bf16)
                pl.BlockSpec((1, F), lambda i: (0, 0)),     # b3 (f32)
                pl.BlockSpec((1, F), lambda i: (0, 0)),     # w_pi row (bf16)
                pl.BlockSpec(memory_space=pltpu.MemorySpace.SMEM),  # b_pi scalar
            ],
            out_specs=pl.BlockSpec((1, TB), lambda i: (0, i)),  # lane-major q row
        ),
        compiler_params=pltpu.CompilerParams(
            dimension_semantics=("parallel",),
        ),
    )(s, a, w1s, w1a, b1, w3, b3, wpi, bpi)

    return out[0, :B][:, None]


def init_params(key, input_dims, n_agents, n_actions, fc2_dims):
    """Deterministic synthetic init (PyTorch-Linear-like uniform bounds)."""
    in1 = input_dims + n_agents * n_actions
    keys = jax.random.split(key, 6)

    def linear(kw, kb, fan_in, fan_out):
        bound = 1.0 / jnp.sqrt(jnp.float32(fan_in))
        w = jax.random.uniform(kw, (fan_in, fan_out), jnp.float32, -bound, bound)
        b = jax.random.uniform(kb, (1, fan_out), jnp.float32, -bound, bound)
        return w, b

    w1, b1 = linear(keys[0], keys[1], in1, fc2_dims)
    w3, b3 = linear(keys[2], keys[3], fc2_dims, fc2_dims)
    wpi_col, bpi = linear(keys[4], keys[5], fc2_dims, 1)

    # Split fc1 weight into state/action parts (concat fused into the kernel);
    # MXU-fed weights stored as bf16, bias/epilogue params stay f32.
    w1s = w1[:input_dims].astype(jnp.bfloat16)
    w1a = w1[input_dims:].astype(jnp.bfloat16)
    w3 = w3.astype(jnp.bfloat16)
    wpi = wpi_col.T.astype(jnp.bfloat16)  # (1, fc2_dims) row for the final dot
    bpi = bpi.reshape(1, 1)               # scalar -> SMEM
    # NOTE: fc2 exists in __init__ but is never used in forward(), so it is omitted.
    # TODO(synk): for real workloads pad fc2_dims / input dims to multiples of 128
    # (model-config change) to fill vregs and MXU passes.
    return (w1s, w1a, b1, w3, b3, wpi, bpi)


if __name__ == "__main__":
    key = jax.random.PRNGKey(0)
    k_state, k_action, k_params = jax.random.split(key, 3)

    B = 8            # batch
    input_dims = 16  # state dims
    n_agents = 2
    n_actions = 4    # action vector per agent -> action input = 8
    fc2_dims = 32

    state = jax.random.normal(k_state, (B, input_dims), jnp.float32)
    action = jax.random.normal(k_action, (B, n_agents * n_actions), jnp.float32)
    params = init_params(k_params, input_dims, n_agents, n_actions, fc2_dims)

    q = critic_forward(state, action, params)
    q = jax.block_until_ready(q)

    # Pure-JAX reference with identical bf16 rounding points, f32 accumulation.
    w1s, w1a, b1, w3, b3, wpi, bpi = params
    s_r = state.astype(jnp.bfloat16).astype(jnp.float32)
    a_r = action.astype(jnp.bfloat16).astype(jnp.float32)
    w1s_r = w1s.astype(jnp.float32)
    w1a_r = w1a.astype(jnp.float32)
    w3_r = w3.astype(jnp.float32)
    wpi_r = wpi.astype(jnp.float32)
    h1 = jnp.maximum(s_r @ w1s_r + a_r @ w1a_r + b1, 0.0)
    h1 = h1.astype(jnp.bfloat16).astype(jnp.float32)
    h3 = jnp.maximum(h1 @ w3_r + b3, 0.0)
    h3 = h3.astype(jnp.bfloat16).astype(jnp.float32)
    q_ref = h3 @ wpi_r.T + bpi[0, 0]

    assert q.shape == (B, 1)
    assert jnp.allclose(q, q_ref, atol=2e-3, rtol=2e-3)

    print("KERNEL_OK")
</pallas_src>

<mosaic_0001>
module attributes {stable_mosaic.version = 11 : i64} {
  func.func @critic_kernel(%arg0: i32, %arg1: memref<16x16xf32, #tpu.memory_space<vmem>>, %arg2: memref<16x8xf32, #tpu.memory_space<vmem>>, %arg3: memref<16x32xbf16, #tpu.memory_space<vmem>>, %arg4: memref<8x32xbf16, #tpu.memory_space<vmem>>, %arg5: memref<1x32xf32, #tpu.memory_space<vmem>>, %arg6: memref<32x32xbf16, #tpu.memory_space<vmem>>, %arg7: memref<1x32xf32, #tpu.memory_space<vmem>>, %arg8: memref<1x32xbf16, #tpu.memory_space<vmem>>, %arg9: memref<1x1xf32, #tpu.memory_space<smem>>, %arg10: memref<1x16xf32, #tpu.memory_space<vmem>>) attributes {dimension_semantics = [#tpu.dimension_semantics<parallel>], iteration_bounds = array<i64: 1>, scalar_prefetch = 0 : i64, scratch_operands = 0 : i64, tpu.core_type = #tpu.core_type<tc>, window_params = [{transform_indices = @transform_0, window_bounds = array<i64: 16, 16>}, {transform_indices = @transform_1, window_bounds = array<i64: 16, 8>}, {pipeline_mode = #tpu.pipeline_mode<synchronous>, transform_indices = @transform_2, window_bounds = array<i64: 16, 32>}, {pipeline_mode = #tpu.pipeline_mode<synchronous>, transform_indices = @transform_3, window_bounds = array<i64: 8, 32>}, {pipeline_mode = #tpu.pipeline_mode<synchronous>, transform_indices = @transform_4, window_bounds = array<i64: 1, 32>}, {pipeline_mode = #tpu.pipeline_mode<synchronous>, transform_indices = @transform_5, window_bounds = array<i64: 32, 32>}, {pipeline_mode = #tpu.pipeline_mode<synchronous>, transform_indices = @transform_6, window_bounds = array<i64: 1, 32>}, {pipeline_mode = #tpu.pipeline_mode<synchronous>, transform_indices = @transform_7, window_bounds = array<i64: 1, 32>}, {transform_indices = @transform_8, window_bounds = array<i64: 1, 1>}, {transform_indices = @transform_9, window_bounds = array<i64: 1, 16>}]} {
    %c0 = arith.constant 0 : index
    %c0_0 = arith.constant 0 : index
    %0 = vector.load %arg1[%c0, %c0_0] : memref<16x16xf32, #tpu.memory_space<vmem>>, vector<16x16xf32>
    %1 = arith.truncf %0 : vector<16x16xf32> to vector<16x16xbf16>
    %c0_1 = arith.constant 0 : index
    %c0_2 = arith.constant 0 : index
    %2 = vector.load %arg2[%c0_1, %c0_2] : memref<16x8xf32, #tpu.memory_space<vmem>>, vector<16x8xf32>
    %3 = arith.truncf %2 : vector<16x8xf32> to vector<16x8xbf16>
    %c0_3 = arith.constant 0 : index
    %c0_4 = arith.constant 0 : index
    %4 = vector.load %arg3[%c0_3, %c0_4] : memref<16x32xbf16, #tpu.memory_space<vmem>>, vector<16x32xbf16>
    %cst = arith.constant dense<0.000000e+00> : vector<16x32xf32>
    %5 = tpu.matmul %1, %4, %cst {dimension_numbers = #tpu.dot_dimension_numbers<[1], [0], [0], [1], [0, 0, 1, 1], [], []>} : vector<16x16xbf16>, vector<16x32xbf16>, vector<16x32xf32> -> vector<16x32xf32>
    %c0_5 = arith.constant 0 : index
    %c0_6 = arith.constant 0 : index
    %6 = vector.load %arg4[%c0_5, %c0_6] : memref<8x32xbf16, #tpu.memory_space<vmem>>, vector<8x32xbf16>
    %cst_7 = arith.constant dense<0.000000e+00> : vector<16x32xf32>
    %7 = tpu.matmul %3, %6, %cst_7 {dimension_numbers = #tpu.dot_dimension_numbers<[1], [0], [0], [1], [0, 0, 1, 1], [], []>} : vector<16x8xbf16>, vector<8x32xbf16>, vector<16x32xf32> -> vector<16x32xf32>
    %8 = arith.addf %5, %7 : vector<16x32xf32>
    %c0_8 = arith.constant 0 : index
    %c0_9 = arith.constant 0 : index
    %9 = vector.load %arg5[%c0_8, %c0_9] : memref<1x32xf32, #tpu.memory_space<vmem>>, vector<1x32xf32>
    %10 = vector.broadcast %9 : vector<1x32xf32> to vector<16x32xf32>
    %11 = arith.addf %8, %10 : vector<16x32xf32>
    %cst_10 = arith.constant 0.000000e+00 : f32
    %12 = vector.broadcast %cst_10 : f32 to vector<16x32xf32>
    %13 = arith.maximumf %11, %12 : vector<16x32xf32>
    %14 = arith.truncf %13 : vector<16x32xf32> to vector<16x32xbf16>
    %c0_11 = arith.constant 0 : index
    %c0_12 = arith.constant 0 : index
    %15 = vector.load %arg6[%c0_11, %c0_12] : memref<32x32xbf16, #tpu.memory_space<vmem>>, vector<32x32xbf16>
    %cst_13 = arith.constant dense<0.000000e+00> : vector<16x32xf32>
    %16 = tpu.matmul %14, %15, %cst_13 {dimension_numbers = #tpu.dot_dimension_numbers<[1], [0], [0], [1], [0, 0, 1, 1], [], []>} : vector<16x32xbf16>, vector<32x32xbf16>, vector<16x32xf32> -> vector<16x32xf32>
    %c0_14 = arith.constant 0 : index
    %c0_15 = arith.constant 0 : index
    %17 = vector.load %arg7[%c0_14, %c0_15] : memref<1x32xf32, #tpu.memory_space<vmem>>, vector<1x32xf32>
    %18 = vector.broadcast %17 : vector<1x32xf32> to vector<16x32xf32>
    %19 = arith.addf %16, %18 : vector<16x32xf32>
    %cst_16 = arith.constant 0.000000e+00 : f32
    %20 = vector.broadcast %cst_16 : f32 to vector<16x32xf32>
    %21 = arith.maximumf %19, %20 : vector<16x32xf32>
    %c0_17 = arith.constant 0 : index
    %c0_18 = arith.constant 0 : index
    %22 = vector.load %arg8[%c0_17, %c0_18] : memref<1x32xbf16, #tpu.memory_space<vmem>>, vector<1x32xbf16>
    %23 = arith.truncf %21 : vector<16x32xf32> to vector<16x32xbf16>
    %cst_19 = arith.constant dense<0.000000e+00> : vector<1x16xf32>
    %24 = tpu.matmul %22, %23, %cst_19 {dimension_numbers = #tpu.dot_dimension_numbers<[1], [1], [0], [0], [0, 0, 1, 0], [], []>} : vector<1x32xbf16>, vector<16x32xbf16>, vector<1x16xf32> -> vector<1x16xf32>
    %c0_20 = arith.constant 0 : index
    %c0_21 = arith.constant 0 : index
    %25 = memref.load %arg9[%c0_20, %c0_21] : memref<1x1xf32, #tpu.memory_space<smem>>
    %26 = vector.broadcast %25 : f32 to vector<1x16xf32>
    %27 = arith.addf %24, %26 : vector<1x16xf32>
    %c0_22 = arith.constant 0 : index
    %c0_23 = arith.constant 0 : index
    %28 = vector.load %arg10[%c0_22, %c0_23] : memref<1x16xf32, #tpu.memory_space<vmem>>, vector<1x16xf32>
    tpu.vector_store %arg10[%c0_22, %c0_23], %27 {strides = array<i32>} : memref<1x16xf32, #tpu.memory_space<vmem>>, vector<1x16xf32>,
    return
  }
  func.func @transform_0(%arg0: i32) -> (i32, i32) {
    %c0_i32 = arith.constant 0 : i32
    %c0_i32_0 = arith.constant 0 : i32
    return %arg0, %c0_i32 : i32, i32
  }
  func.func @transform_1(%arg0: i32) -> (i32, i32) {
    %c0_i32 = arith.constant 0 : i32
    %c0_i32_0 = arith.constant 0 : i32
    return %arg0, %c0_i32 : i32, i32
  }
  func.func @transform_2(%arg0: i32) -> (i32, i32) {
    %c0_i32 = arith.constant 0 : i32
    %c0_i32_0 = arith.constant 0 : i32
    %c0_i32_1 = arith.constant 0 : i32
    return %c0_i32, %c0_i32_0 : i32, i32
  }
  func.func @transform_3(%arg0: i32) -> (i32, i32) {
    %c0_i32 = arith.constant 0 : i32
    %c0_i32_0 = arith.constant 0 : i32
    %c0_i32_1 = arith.constant 0 : i32
    return %c0_i32, %c0_i32_0 : i32, i32
  }
  func.func @transform_4(%arg0: i32) -> (i32, i32) {
    %c0_i32 = arith.constant 0 : i32
    %c0_i32_0 = arith.constant 0 : i32
    %c0_i32_1 = arith.constant 0 : i32
    return %c0_i32, %c0_i32_0 : i32, i32
  }
  func.func @transform_5(%arg0: i32) -> (i32, i32) {
    %c0_i32 = arith.constant 0 : i32
    %c0_i32_0 = arith.constant 0 : i32
    %c0_i32_1 = arith.constant 0 : i32
    return %c0_i32, %c0_i32_0 : i32, i32
  }
  func.func @transform_6(%arg0: i32) -> (i32, i32) {
    %c0_i32 = arith.constant 0 : i32
    %c0_i32_0 = arith.constant 0 : i32
    %c0_i32_1 = arith.constant 0 : i32
    return %c0_i32, %c0_i32_0 : i32, i32
  }
  func.func @transform_7(%arg0: i32) -> (i32, i32) {
    %c0_i32 = arith.constant 0 : i32
    %c0_i32_0 = arith.constant 0 : i32
    %c0_i32_1 = arith.constant 0 : i32
    return %c0_i32, %c0_i32_0 : i32, i32
  }
  func.func @transform_8(%arg0: i32) -> (i32, i32) {
    %c0_i32 = arith.constant 0 : i32
    %c0_i32_0 = arith.constant 0 : i32
    %c0_i32_1 = arith.constant 0 : i32
    return %c0_i32, %c0_i32_0 : i32, i32
  }
  func.func @transform_9(%arg0: i32) -> (i32, i32) {
    %c0_i32 = arith.constant 0 : i32
    %c0_i32_0 = arith.constant 0 : i32
    return %c0_i32, %arg0 : i32, i32
  }
}

</mosaic_0001>

<bundles_post_ra>
// kernel: tpu_custom_call.1
= control target key start
LH: loop header
LB: loop body
LE: loop exit
PB: predicated region body
PF: predicated region fallthrough
CT: control target
= control target key end

     0   :  { %15 = vsyncpa [#allocation4], 0  ;;  %s528_s0 = inlined_call_operand.vmem [shape: f32[16,16], index: 0, kind: input, shape index: {}]   ;;  %s529_s1 = inlined_call_operand.vmem [shape: f32[16,8], index: 1, kind: input, shape index: {}]   ;;  %s530_s2 = inlined_call_operand.hbm [shape: bf16[16,32], index: 2, kind: input, shape index: {}]   ;;  %s531_s3 = inlined_call_operand.vmem [shape: bf16[8,32], index: 3, kind: input, shape index: {}]   ;;  %s532_s4 = inlined_call_operand.vmem [shape: f32[1,32], index: 4, kind: input, shape index: {}]   ;;  %s533_s5 = inlined_call_operand.vmem [shape: bf16[32,32], index: 5, kind: input, shape index: {}]   ;;  %s534_s6 = inlined_call_operand.vmem [shape: f32[1,32], index: 6, kind: input, shape index: {}]   ;;  %s535_s7 = inlined_call_operand.vmem [shape: bf16[1,32], index: 7, kind: input, shape index: {}]   ;;  %s536_s8 = inlined_call_operand.<no memory space> [shape: f32[1,1], index: 8, kind: input, shape index: {}]   ;;  %s537_s9 = inlined_call_operand.hbm [shape: f32[1,16], index: 9, kind: output, shape index: {}]  }
   0x1   :  { %16 = vsyncpa [#allocation5], 0  ;;  %s408_s30 = smov [#allocation3]   ;;  %s360_s13 = scalar_lea.hbm %s530_s2, 128 }
   0x2   :  { %s26_s10 = sshll.u32 %s408_s30, 4  ;;  %p361_p0 = scmp.ne.s32.totalorder %s530_s2, %s360_s13  ;;  %s27_s10 = int_to_ptr.vmem [resolvable:$true] %s26_s10 }
   0x3   :  { %p364_p1 = scmp.lt.u32.totalorder %s360_s13, %s530_s2 }
   0x5   :  { %p366_p2 = pnand %p364_p1, %p361_p0 }
   0x7   :  { %369 = shalt.err (!%p366_p2)
}
   0x8   :  { %s370_s18 = scalar_lea.vmem %s27_s10, 128  ;;  %p375_p4 = scmp.lt.s32.totalorder %s27_s10, %s27_s10 }
   0x9   :  { %p371_p3 = scmp.ne.s32.totalorder %s27_s10, %s370_s18  ;;  %p376_p5 = scmp.lt.s32.totalorder %s370_s18, %s370_s18 }
   0xb   :  { %p377_p6 = por %p376_p5, %p375_p4 }
   0xd   :  { %p378_p7 = pnand %p377_p6, %p371_p3 }
   0xf   :  { %381 = shalt.err (!%p378_p7)
}
  0x10   :  { %s409_s19 = smov 64   ;;  %s410_s20 = smov 4  }
  0x11   :  { %32 = dma.hbm_to_vmem [thread:$0]  %s530_s2, 128, %s27_s10, [#allocation4], %s409_s19, %s409_s19, %s410_s20  }
  0x12   :  { %404 = dma.done.wait [#allocation4], 128  }
  0x13   :  { %405 = vsyncadd [#allocation4], 4294967168  ;;  %v411_v0 = vmov 0.0   ;;  %vm412_vm0 = vmmov 0   ;;  %vm62_vm1 = vcmask 1043456   ;;  %v357_v3 = vld [vmem:[#allocation3] sm:$0xff]   ;;  %v243_v40 = vstv %s536_s8 }
  0x14   :  { %325 = vmatprep.subr.bf16.mxu0 %v411_v0  ;;  %331 = vmatprep.subr.bf16.mxu1 %v411_v0  ;;  %v57_v1 = vld [vmem:[%s531_s3] sm:$0xf]  ;;  %v53_v5 = vld [vmem:[%s529_s1 + $0x8] sm:$0xff]  ;;  %vm58_vm2 = vcmask 64512   ;;  %vm113_vm3 = vcmask 130048   ;;  %vm193_vm4 = vcmask 261120  }
  0x15   :  { %327 = vmatprep.mubr.msk.bf16.mxu0 %vm412_vm0, %v411_v0  ;;  %333 = vmatprep.mubr.msk.bf16.mxu1 %vm412_vm0, %v411_v0  ;;  %v64_v2 = vsel %vm62_vm1, %v57_v1, 0  ;;  %v52_v4 = vld [vmem:[%s529_s1] sm:$0xff]  ;;  %v50_v8 = vld [vmem:[%s528_s0 + $0x8] sm:$0xff]  ;;  %s413_s17 = smov [#allocation6]   ;;  %vm290_vm5 = vcmask 122880  }
  0x16   :  { %326 = vmatpush3.bf16.msra.mxu0 %v64_v2  ;;  %v54_v6 = vpack.c.bf16 %v53_v5, %v52_v4  ;;  %v49_v7 = vld [vmem:[%s528_s0] sm:$0xff]  ;;  %332 = vmatpush3.bf16.msra.mxu1 %v357_v3  ;;  %v359_v11 = vld [vmem:[%s533_s5 + $0x8] sm:$0xff]   ;;  %s298_s18 = sshll.u32 %s413_s17, 4  ;;  %s299_s18 = int_to_ptr.vmem [resolvable:$true] %s298_s18 }
  0x17   :  { %v51_v9 = vpack.c.bf16 %v50_v8, %v49_v7  ;;  %337 = vmatprep.subr.bf16.mxu0 %v411_v0  ;;  %345 = vmatprep.subr.bf16.mxu1 %v411_v0  ;;  %v358_v10 = vld [vmem:[%s533_s5] sm:$0xff]   ;;  %s382_s19 = scalar_lea.vmem %s299_s18, 16  ;;  %s386_s20 = scalar_lea.vmem %s299_s18, 32 }
  0x18   :  { %v310_v15 = vld [vmem:[%s532_s4] ss:$0 sm:$0xff]  ;;  %p383_p8 = scmp.ne.s32.totalorder %s299_s18, %s382_s19  ;;  %p387_p9 = scmp.lt.s32.totalorder %s299_s18, %s299_s18 }
  0x19   :  { %328 = vmatmul.mubr.msk.bf16.vlgmr.msra.gmra.mrb[0].mxu0 %vm58_vm2, %v54_v6  ;;  %334 = vmatmul.mubr.msk.bf16.vlgmr.msra.gmra.mrb[0].mxu1 %vm113_vm3, %v51_v9  ;;  %v311_v28 = vld [vmem:[%s534_s6] ss:$0 sm:$0xff]  ;;  %p388_p10 = scmp.lt.s32.totalorder %s386_s20, %s382_s19 }
  0x1a   :  { %341 = vmatprep.mubr.msk.bf16.mxu0 %vm412_vm0, %v411_v0  ;;  %347 = vmatprep.mubr.msk.bf16.mxu1 %vm412_vm0, %v411_v0  ;;  %v240_v39 = vld [vmem:[%s535_s7] sm:$0x1] }
  0x1b   :  { %338 = vmatpush3.bf16.msra.mxu0 %v358_v10  ;;  %p389_p11 = por %p388_p10, %p387_p9 }
  0x1c   :  { %339 = vmatprep.subr.bf16.mxu0 %v411_v0 }
  0x1d   :  { %p390_p12 = pnand %p389_p11, %p383_p8 }
  0x1f   :  { %340 = vmatpush3.bf16.msra.mxu0 %v359_v11 }
  0xec   :  { %v100_v12 = vpop.f32.mrb[0].mxu0  ;;  %v151_v14 = vpop.f32.mrb[0].mxu1 }
  0xed   :  { %v329_v13 = vpop.f32.mrb[1].mxu0  ;;  %v152_v16 = vadd.f32 %v151_v14, %v100_v12  ;;  %v335_v18 = vpop.f32.mrb[1].mxu1 }
  0xee   :  { %v103_v17 = vpop.f32.mrb[2].mxu0  ;;  %v154_v20 = vpop.f32.mrb[2].mxu1 }
  0xef   :  { %v330_v19 = vpop.f32.mrb[3].mxu0  ;;  %v165_v21 = vadd.f32 %v310_v15, %v152_v16  ;;  %v155_v22 = vadd.f32 %v154_v20, %v103_v17  ;;  %v336_v23 = vpop.f32.mrb[3].mxu1 }
  0xf1   :  { %v166_v24 = vadd.f32 %v310_v15, %v155_v22  ;;  %v167_v25 = vmax.f32 %v165_v21, 0.0 }
  0xf3   :  { %v168_v26 = vmax.f32 %v166_v24, 0.0 }
  0xf5   :  { %v169_v27 = vpack.c.bf16 %v168_v26, %v167_v25 }
  0xf7   :  { %342 = vmatmul.mubr.msk.bf16.vlgmr.msra.gmra.mrb[4].mxu0 %vm193_vm4, %v169_v27 }
 0x1ca   :  { %v231_v29 = vpop.f32.mrb[4].mxu0 }
 0x1cb   :  { %v232_v30 = vadd.f32 %v311_v28, %v231_v29  ;;  %v343_v31 = vpop.f32.mrb[5].mxu0 }
 0x1cc   :  { %v234_v32 = vpop.f32.mrb[6].mxu0 }
 0x1cd   :  { %v235_v33 = vadd.f32 %v311_v28, %v234_v32  ;;  %v344_v34 = vpop.f32.mrb[7].mxu0  ;;  %v238_v35 = vmax.f32 %v232_v30, 0.0 }
 0x1cf   :  { %v239_v36 = vmax.f32 %v235_v33, 0.0 }
 0x1d1   :  { %v241_v37 = vpack.c.bf16 %v239_v36, %v238_v35 }
 0x1d3   :  { %v248_v38 = vsel %vm193_vm4, %v241_v37, 0 }
 0x1d4   :  { %346 = vmatpush3.bf16.xpose.msra.mxu1 %v248_v38 }
 0x1db   :  { %348 = vmatmul.mubr.msk.bf16.vlgmr.msra.gmra.mrb[4].mxu1 %vm193_vm4, %v240_v39 }
 0x2ae   :  { %v284_v41 = vpop.f32.mrb[4].mxu1 }
 0x2af   :  { %v285_v42 = vadd.f32 %v284_v41, %v243_v40  ;;  %v349_v43 = vpop.f32.mrb[5].mxu1 }
 0x2b0   :  { %v287_v44 = vpop.f32.mrb[6].mxu1 }
 0x2b1   :  { %v350_v45 = vpop.f32.mrb[7].mxu1  ;;  %291 = vst.msk [vmem:[#allocation6] sm:$0x1] %vm290_vm5, %v285_v42 }
 0x2b2   :  { %393 = shalt.err (!%p390_p12)
}
 0x2b3   :  { %s394_s21 = scalar_lea.hbm %s537_s9, 16 }
 0x2b4   :  { %p395_p13 = scmp.ne.s32.totalorder %s537_s9, %s394_s21  ;;  %p398_p0 = scmp.lt.u32.totalorder %s394_s21, %s537_s9 }
 0x2b6   :  { %p400_p1 = pnand %p398_p0, %p395_p13 }
 0x2b8   :  { %403 = shalt.err (!%p400_p1)
}
 0x2b9   :  { %301 = dma.vmem_to_hbm [thread:$0]  %s299_s18, 16, %s537_s9, [#allocation5]  }
 0x2ba   :  { %406 = dma.done.wait [#allocation5], 16  }
 0x2bb   :  { %407 = vsyncadd [#allocation5], 4294967280 }
 0x2bc   :  { %305 = vsyncpa [#allocation4], 1 }
 0x2bd   :  { %306 = vsyncpa [#allocation5], 1 }

</bundles_post_ra>
